<compile_context>
chip_gen: v7x
topology: tpu7x:2x2x1
jax: 0.10.0
libtpu: 0.0.40
codegen_flags: <defaults>
</compile_context>

<pallas_src>
import functools

import jax
import jax.numpy as jnp
import numpy as np
from jax.experimental import pallas as pl
from jax.experimental.pallas import tpu as pltpu

# Tap order (dy, dx) row-major == conv kernel (ky, kx) = (dy+1, dx+1) row-major.
_TAPS = tuple((dy, dx) for dy in (-1, 0, 1) for dx in (-1, 0, 1))


def _resblock_v1_kernel(x_ref, w1_ref, b1_ref, w2_ref, b2_ref, mask_ref,
                        out_ref, *, W):
    """Fused resblock: conv3x3+mfm -> conv3x3+mfm -> +residual.

    x_ref   : (B_t, C, L)  lane-padded flattened NCHW input block (= residual)
    w*_ref  : (9, 2C, C)   per-tap conv weights, tap order (dy, dx) row-major
    b*_ref  : (2C, 1)      biases (broadcast over the lane axis)
    mask_ref: (9, 1, L)    0/1 tap-validity masks (zero padding + lane padding)
    out_ref : (B_t, C, L)
    """
    B_t, C, L = x_ref.shape
    masks = mask_ref[...]                                   # (9, 1, L), hoisted

    def conv_mfm(src, w_ref, b_ref):
        # 9 accumulating (2C, C) @ (C, L) MXU matmuls with f32 accumulation.
        # Each tap = one XLU roll + one VPU mask-multiply, consumed immediately
        # (the (9C, L) im2col tensor is never materialized).
        acc = None
        for k, (dy, dx) in enumerate(_TAPS):
            d = dy * W + dx
            tap = src if d == 0 else pltpu.roll(src, shift=(-d) % L, axis=1)
            if (dy, dx) != (0, 0):
                tap = tap * masks[k]                        # (1, L) broadcast
            p = jnp.dot(w_ref[k], tap, preferred_element_type=jnp.float32)
            acc = p if acc is None else acc + p
        acc = acc + b_ref[...].astype(jnp.float32)          # bias over lanes
        return jnp.maximum(acc[:C], acc[C:])                # mfm: max of halves

    # Independent images in one block: scheduler can overlap one image's MXU
    # matmuls with the next image's VPU/XLU tap construction.
    for b in range(B_t):
        x = x_ref[b]                                        # (C, L), native dt
        out1 = conv_mfm(x, w1_ref, b1_ref).astype(x.dtype)
        out2 = conv_mfm(out1, w2_ref, b2_ref)               # (C, L) f32
        out_ref[b] = (out2 + x.astype(jnp.float32)).astype(out_ref.dtype)


def _per_tap_weights(w_oihw):
    # (O, I, 3, 3) -> (9, O, I); tap k = (dy+1)*3 + (dx+1) matches _TAPS order.
    O, I, KY, KX = w_oihw.shape
    return jnp.transpose(w_oihw, (2, 3, 0, 1)).reshape(KY * KX, O, I)


def _tap_masks(H, W, HW_pad, dtype):
    # 0/1 validity of every tap at every (lane-padded) flattened position.
    # Also guarantees correctness of the circular pltpu.roll: any position whose
    # rolled read would wrap (or land in lane padding) has an invalid tap here.
    h = np.arange(H)[:, None]
    w = np.arange(W)[None, :]
    rows = []
    for dy, dx in _TAPS:
        valid = ((h + dy >= 0) & (h + dy < H) &
                 (w + dx >= 0) & (w + dx < W)).astype(np.float32).reshape(-1)
        rows.append(np.pad(valid, (0, HW_pad - H * W)))
    return jnp.asarray(np.stack(rows, 0).reshape(9, 1, HW_pad), dtype=dtype)


def _pick_batch_tile(N, C, HW_pad, itemsize):
    # Largest divisor of N that keeps >= 2 parallel grid steps (v7x megacore)
    # and a modest per-step VMEM footprint.
    best = 1
    for bt in range(1, N + 1):
        if N % bt:
            continue
        if N >= 2 and N // bt < 2:
            break
        approx = bt * C * HW_pad * (4 * itemsize + 16)      # blocks + f32 temps
        if approx > 16 * 1024 * 1024:
            break
        best = bt
    return best


def resblock_v1_forward(x_nchw, w1_oihw, b1, w2_oihw, b2, *, batch_tile=None):
    """Pallas implementation of resblock_v1.forward.  x_nchw: (N, C, H, W)."""
    N, C, H, W = x_nchw.shape
    HW = H * W
    HW_pad = ((HW + 127) // 128) * 128          # lane-dense (multiple of 128)
    itemsize = np.dtype(x_nchw.dtype).itemsize
    if batch_tile is None:
        batch_tile = _pick_batch_tile(N, C, HW_pad, itemsize)
    assert N % batch_tile == 0

    x_flat = x_nchw.reshape(N, C, HW)
    if HW_pad != HW:
        x_flat = jnp.pad(x_flat, ((0, 0), (0, 0), (0, HW_pad - HW)))

    w1t = _per_tap_weights(w1_oihw)             # (9, 2C, C)
    w2t = _per_tap_weights(w2_oihw)
    b1c = b1.reshape(-1, 1)                     # (2C, 1)
    b2c = b2.reshape(-1, 1)
    masks = _tap_masks(H, W, HW_pad, x_nchw.dtype)

    kernel = functools.partial(_resblock_v1_kernel, W=W)

    # Explicit VMEM budget: double-buffered in/out blocks + weights + masks +
    # in-kernel f32 temporaries, x2 margin, clamped to v7x's 64 MiB physical.
    block_bytes = batch_tile * C * HW_pad * itemsize
    est = (4 * block_bytes
           + 2 * 9 * 2 * C * C * 4 + 2 * 2 * C * 4
           + 9 * HW_pad * itemsize
           + 6 * batch_tile * C * HW_pad * 4)
    vmem_limit = int(min(max(2 * est, 16 * 1024 * 1024), 64 * 1024 * 1024))

    out_flat = pl.pallas_call(
        kernel,
        out_shape=jax.ShapeDtypeStruct((N, C, HW_pad), x_nchw.dtype),
        grid_spec=pltpu.PrefetchScalarGridSpec(
            num_scalar_prefetch=0,
            grid=(N // batch_tile,),
            in_specs=[
                pl.BlockSpec((batch_tile, C, HW_pad), lambda n: (n, 0, 0)),
                pl.BlockSpec((9, 2 * C, C), lambda n: (0, 0, 0)),
                pl.BlockSpec((2 * C, 1), lambda n: (0, 0)),
                pl.BlockSpec((9, 2 * C, C), lambda n: (0, 0, 0)),
                pl.BlockSpec((2 * C, 1), lambda n: (0, 0)),
                pl.BlockSpec((9, 1, HW_pad), lambda n: (0, 0, 0)),
            ],
            out_specs=pl.BlockSpec((batch_tile, C, HW_pad),
                                   lambda n: (n, 0, 0)),
        ),
        compiler_params=pltpu.CompilerParams(
            dimension_semantics=("parallel",),
            vmem_limit_bytes=vmem_limit),
    )(x_flat, w1t, b1c, w2t, b2c, masks)

    out = out_flat[..., :HW] if HW_pad != HW else out_flat
    return out.reshape(N, C, H, W)


# ---------------------------- pure-JAX reference ----------------------------

def _mfm_conv_ref(x_nchw, w_oihw, b):
    y = jax.lax.conv_general_dilated(
        x_nchw, w_oihw, window_strides=(1, 1),
        padding=((1, 1), (1, 1)),
        dimension_numbers=("NCHW", "OIHW", "NCHW"))
    y = y + b[None, :, None, None]
    a, bb = jnp.split(y, 2, axis=1)
    return jnp.maximum(a, bb)


def resblock_v1_reference(x_nchw, w1, b1, w2, b2):
    out = _mfm_conv_ref(x_nchw, w1, b1)
    out = _mfm_conv_ref(out, w2, b2)
    return out + x_nchw


if __name__ == "__main__":
    # small shapes consistent with the module: residual requires Cin == Cout
    N, C, H, W = 2, 4, 16, 16

    key = jax.random.PRNGKey(0)
    kx, kw1, kb1, kw2, kb2 = jax.random.split(key, 5)

    x = jax.random.normal(kx, (N, C, H, W), dtype=jnp.float32)

    # conv1: Conv2d(C, 2*C, 3, 1, 1) ; conv2: Conv2d(C, 2*C, 3, 1, 1)
    fan_in = C * 3 * 3
    scale = 1.0 / np.sqrt(fan_in)
    w1 = jax.random.uniform(kw1, (2 * C, C, 3, 3), jnp.float32, -scale, scale)
    b1 = jax.random.uniform(kb1, (2 * C,), jnp.float32, -scale, scale)
    w2 = jax.random.uniform(kw2, (2 * C, C, 3, 3), jnp.float32, -scale, scale)
    b2 = jax.random.uniform(kb2, (2 * C,), jnp.float32, -scale, scale)

    out = jax.jit(resblock_v1_forward)(x, w1, b1, w2, b2)
    out = jax.block_until_ready(out)

    ref = resblock_v1_reference(x, w1, b1, w2, b2)
    assert out.shape == (N, C, H, W), out.shape
    np.testing.assert_allclose(np.asarray(out), np.asarray(ref),
                               rtol=1e-4, atol=1e-4)
    print("KERNEL_OK")
</pallas_src>

<mosaic_0001>
module attributes {stable_mosaic.version = 11 : i64} {
  func.func @_resblock_v1_kernel(%arg0: i32, %arg1: memref<1x4x256xf32, #tpu.memory_space<vmem>>, %arg2: memref<9x8x4xf32, #tpu.memory_space<vmem>>, %arg3: memref<8x1xf32, #tpu.memory_space<vmem>>, %arg4: memref<9x8x4xf32, #tpu.memory_space<vmem>>, %arg5: memref<8x1xf32, #tpu.memory_space<vmem>>, %arg6: memref<9x1x256xf32, #tpu.memory_space<vmem>>, %arg7: memref<1x4x256xf32, #tpu.memory_space<vmem>>) attributes {dimension_semantics = [#tpu.dimension_semantics<parallel>], iteration_bounds = array<i64: 2>, scalar_prefetch = 0 : i64, scratch_operands = 0 : i64, tpu.core_type = #tpu.core_type<tc>, window_params = [{transform_indices = @transform_0, window_bounds = array<i64: 1, 4, 256>}, {pipeline_mode = #tpu.pipeline_mode<synchronous>, transform_indices = @transform_1, window_bounds = array<i64: 9, 8, 4>}, {pipeline_mode = #tpu.pipeline_mode<synchronous>, transform_indices = @transform_2, window_bounds = array<i64: 8, 1>}, {pipeline_mode = #tpu.pipeline_mode<synchronous>, transform_indices = @transform_3, window_bounds = array<i64: 9, 8, 4>}, {pipeline_mode = #tpu.pipeline_mode<synchronous>, transform_indices = @transform_4, window_bounds = array<i64: 8, 1>}, {pipeline_mode = #tpu.pipeline_mode<synchronous>, transform_indices = @transform_5, window_bounds = array<i64: 9, 1, 256>}, {transform_indices = @transform_6, window_bounds = array<i64: 1, 4, 256>}]} {
    %c0 = arith.constant 0 : index
    %c0_0 = arith.constant 0 : index
    %c0_1 = arith.constant 0 : index
    %0 = vector.load %arg6[%c0, %c0_0, %c0_1] : memref<9x1x256xf32, #tpu.memory_space<vmem>>, vector<9x1x256xf32>
    %c0_2 = arith.constant 0 : index
    %c0_3 = arith.constant 0 : index
    %c0_4 = arith.constant 0 : index
    %1 = vector.load %arg1[%c0_2, %c0_3, %c0_4] : memref<1x4x256xf32, #tpu.memory_space<vmem>>, vector<1x4x256xf32>
    %2 = vector.shape_cast %1 : vector<1x4x256xf32> to vector<4x256xf32>
    %c17_i32 = arith.constant 17 : i32
    %3 = tpu.dynamic_rotate %2 by %c17_i32 dim 1 : vector<4x256xf32>, i32 -> vector<4x256xf32>
    %4 = vector.extract_strided_slice %0 {offsets = [0, 0, 0], sizes = [1, 1, 256], strides = [1, 1, 1]} : vector<9x1x256xf32> to vector<1x1x256xf32>
    %5 = vector.shape_cast %4 : vector<1x1x256xf32> to vector<1x256xf32>
    %6 = vector.broadcast %5 : vector<1x256xf32> to vector<4x256xf32>
    %7 = arith.mulf %3, %6 : vector<4x256xf32>
    %c0_5 = arith.constant 0 : index
    %c0_6 = arith.constant 0 : index
    %c0_7 = arith.constant 0 : index
    %8 = vector.load %arg2[%c0_5, %c0_6, %c0_7] : memref<9x8x4xf32, #tpu.memory_space<vmem>>, vector<1x8x4xf32>
    %9 = vector.shape_cast %8 : vector<1x8x4xf32> to vector<8x4xf32>
    %cst = arith.constant dense<0.000000e+00> : vector<8x256xf32>
    %10 = tpu.matmul %9, %7, %cst {dimension_numbers = #tpu.dot_dimension_numbers<[1], [0], [0], [1], [0, 0, 1, 1], [], []>} : vector<8x4xf32>, vector<4x256xf32>, vector<8x256xf32> -> vector<8x256xf32>
    %c16_i32 = arith.constant 16 : i32
    %11 = tpu.dynamic_rotate %2 by %c16_i32 dim 1 : vector<4x256xf32>, i32 -> vector<4x256xf32>
    %12 = vector.extract_strided_slice %0 {offsets = [1, 0, 0], sizes = [1, 1, 256], strides = [1, 1, 1]} : vector<9x1x256xf32> to vector<1x1x256xf32>
    %13 = vector.shape_cast %12 : vector<1x1x256xf32> to vector<1x256xf32>
    %14 = vector.broadcast %13 : vector<1x256xf32> to vector<4x256xf32>
    %15 = arith.mulf %11, %14 : vector<4x256xf32>
    %c1 = arith.constant 1 : index
    %c0_8 = arith.constant 0 : index
    %c0_9 = arith.constant 0 : index
    %16 = vector.load %arg2[%c1, %c0_8, %c0_9] : memref<9x8x4xf32, #tpu.memory_space<vmem>>, vector<1x8x4xf32>
    %17 = vector.shape_cast %16 : vector<1x8x4xf32> to vector<8x4xf32>
    %cst_10 = arith.constant dense<0.000000e+00> : vector<8x256xf32>
    %18 = tpu.matmul %17, %15, %cst_10 {dimension_numbers = #tpu.dot_dimension_numbers<[1], [0], [0], [1], [0, 0, 1, 1], [], []>} : vector<8x4xf32>, vector<4x256xf32>, vector<8x256xf32> -> vector<8x256xf32>
    %19 = arith.addf %10, %18 : vector<8x256xf32>
    %c15_i32 = arith.constant 15 : i32
    %20 = tpu.dynamic_rotate %2 by %c15_i32 dim 1 : vector<4x256xf32>, i32 -> vector<4x256xf32>
    %21 = vector.extract_strided_slice %0 {offsets = [2, 0, 0], sizes = [1, 1, 256], strides = [1, 1, 1]} : vector<9x1x256xf32> to vector<1x1x256xf32>
    %22 = vector.shape_cast %21 : vector<1x1x256xf32> to vector<1x256xf32>
    %23 = vector.broadcast %22 : vector<1x256xf32> to vector<4x256xf32>
    %24 = arith.mulf %20, %23 : vector<4x256xf32>
    %c2 = arith.constant 2 : index
    %c0_11 = arith.constant 0 : index
    %c0_12 = arith.constant 0 : index
    %25 = vector.load %arg2[%c2, %c0_11, %c0_12] : memref<9x8x4xf32, #tpu.memory_space<vmem>>, vector<1x8x4xf32>
    %26 = vector.shape_cast %25 : vector<1x8x4xf32> to vector<8x4xf32>
    %cst_13 = arith.constant dense<0.000000e+00> : vector<8x256xf32>
    %27 = tpu.matmul %26, %24, %cst_13 {dimension_numbers = #tpu.dot_dimension_numbers<[1], [0], [0], [1], [0, 0, 1, 1], [], []>} : vector<8x4xf32>, vector<4x256xf32>, vector<8x256xf32> -> vector<8x256xf32>
    %28 = arith.addf %19, %27 : vector<8x256xf32>
    %c1_i32 = arith.constant 1 : i32
    %29 = tpu.dynamic_rotate %2 by %c1_i32 dim 1 : vector<4x256xf32>, i32 -> vector<4x256xf32>
    %30 = vector.extract_strided_slice %0 {offsets = [3, 0, 0], sizes = [1, 1, 256], strides = [1, 1, 1]} : vector<9x1x256xf32> to vector<1x1x256xf32>
    %31 = vector.shape_cast %30 : vector<1x1x256xf32> to vector<1x256xf32>
    %32 = vector.broadcast %31 : vector<1x256xf32> to vector<4x256xf32>
    %33 = arith.mulf %29, %32 : vector<4x256xf32>
    %c3 = arith.constant 3 : index
    %c0_14 = arith.constant 0 : index
    %c0_15 = arith.constant 0 : index
    %34 = vector.load %arg2[%c3, %c0_14, %c0_15] : memref<9x8x4xf32, #tpu.memory_space<vmem>>, vector<1x8x4xf32>
    %35 = vector.shape_cast %34 : vector<1x8x4xf32> to vector<8x4xf32>
    %cst_16 = arith.constant dense<0.000000e+00> : vector<8x256xf32>
    %36 = tpu.matmul %35, %33, %cst_16 {dimension_numbers = #tpu.dot_dimension_numbers<[1], [0], [0], [1], [0, 0, 1, 1], [], []>} : vector<8x4xf32>, vector<4x256xf32>, vector<8x256xf32> -> vector<8x256xf32>
    %37 = arith.addf %28, %36 : vector<8x256xf32>
    %c4 = arith.constant 4 : index
    %c0_17 = arith.constant 0 : index
    %c0_18 = arith.constant 0 : index
    %38 = vector.load %arg2[%c4, %c0_17, %c0_18] : memref<9x8x4xf32, #tpu.memory_space<vmem>>, vector<1x8x4xf32>
    %39 = vector.shape_cast %38 : vector<1x8x4xf32> to vector<8x4xf32>
    %cst_19 = arith.constant dense<0.000000e+00> : vector<8x256xf32>
    %40 = tpu.matmul %39, %2, %cst_19 {dimension_numbers = #tpu.dot_dimension_numbers<[1], [0], [0], [1], [0, 0, 1, 1], [], []>} : vector<8x4xf32>, vector<4x256xf32>, vector<8x256xf32> -> vector<8x256xf32>
    %41 = arith.addf %37, %40 : vector<8x256xf32>
    %c255_i32 = arith.constant 255 : i32
    %42 = tpu.dynamic_rotate %2 by %c255_i32 dim 1 : vector<4x256xf32>, i32 -> vector<4x256xf32>
    %43 = vector.extract_strided_slice %0 {offsets = [5, 0, 0], sizes = [1, 1, 256], strides = [1, 1, 1]} : vector<9x1x256xf32> to vector<1x1x256xf32>
    %44 = vector.shape_cast %43 : vector<1x1x256xf32> to vector<1x256xf32>
    %45 = vector.broadcast %44 : vector<1x256xf32> to vector<4x256xf32>
    %46 = arith.mulf %42, %45 : vector<4x256xf32>
    %c5 = arith.constant 5 : index
    %c0_20 = arith.constant 0 : index
    %c0_21 = arith.constant 0 : index
    %47 = vector.load %arg2[%c5, %c0_20, %c0_21] : memref<9x8x4xf32, #tpu.memory_space<vmem>>, vector<1x8x4xf32>
    %48 = vector.shape_cast %47 : vector<1x8x4xf32> to vector<8x4xf32>
    %cst_22 = arith.constant dense<0.000000e+00> : vector<8x256xf32>
    %49 = tpu.matmul %48, %46, %cst_22 {dimension_numbers = #tpu.dot_dimension_numbers<[1], [0], [0], [1], [0, 0, 1, 1], [], []>} : vector<8x4xf32>, vector<4x256xf32>, vector<8x256xf32> -> vector<8x256xf32>
    %50 = arith.addf %41, %49 : vector<8x256xf32>
    %c241_i32 = arith.constant 241 : i32
    %51 = tpu.dynamic_rotate %2 by %c241_i32 dim 1 : vector<4x256xf32>, i32 -> vector<4x256xf32>
    %52 = vector.extract_strided_slice %0 {offsets = [6, 0, 0], sizes = [1, 1, 256], strides = [1, 1, 1]} : vector<9x1x256xf32> to vector<1x1x256xf32>
    %53 = vector.shape_cast %52 : vector<1x1x256xf32> to vector<1x256xf32>
    %54 = vector.broadcast %53 : vector<1x256xf32> to vector<4x256xf32>
    %55 = arith.mulf %51, %54 : vector<4x256xf32>
    %c6 = arith.constant 6 : index
    %c0_23 = arith.constant 0 : index
    %c0_24 = arith.constant 0 : index
    %56 = vector.load %arg2[%c6, %c0_23, %c0_24] : memref<9x8x4xf32, #tpu.memory_space<vmem>>, vector<1x8x4xf32>
    %57 = vector.shape_cast %56 : vector<1x8x4xf32> to vector<8x4xf32>
    %cst_25 = arith.constant dense<0.000000e+00> : vector<8x256xf32>
    %58 = tpu.matmul %57, %55, %cst_25 {dimension_numbers = #tpu.dot_dimension_numbers<[1], [0], [0], [1], [0, 0, 1, 1], [], []>} : vector<8x4xf32>, vector<4x256xf32>, vector<8x256xf32> -> vector<8x256xf32>
    %59 = arith.addf %50, %58 : vector<8x256xf32>
    %c240_i32 = arith.constant 240 : i32
    %60 = tpu.dynamic_rotate %2 by %c240_i32 dim 1 : vector<4x256xf32>, i32 -> vector<4x256xf32>
    %61 = vector.extract_strided_slice %0 {offsets = [7, 0, 0], sizes = [1, 1, 256], strides = [1, 1, 1]} : vector<9x1x256xf32> to vector<1x1x256xf32>
    %62 = vector.shape_cast %61 : vector<1x1x256xf32> to vector<1x256xf32>
    %63 = vector.broadcast %62 : vector<1x256xf32> to vector<4x256xf32>
    %64 = arith.mulf %60, %63 : vector<4x256xf32>
    %c7 = arith.constant 7 : index
    %c0_26 = arith.constant 0 : index
    %c0_27 = arith.constant 0 : index
    %65 = vector.load %arg2[%c7, %c0_26, %c0_27] : memref<9x8x4xf32, #tpu.memory_space<vmem>>, vector<1x8x4xf32>
    %66 = vector.shape_cast %65 : vector<1x8x4xf32> to vector<8x4xf32>
    %cst_28 = arith.constant dense<0.000000e+00> : vector<8x256xf32>
    %67 = tpu.matmul %66, %64, %cst_28 {dimension_numbers = #tpu.dot_dimension_numbers<[1], [0], [0], [1], [0, 0, 1, 1], [], []>} : vector<8x4xf32>, vector<4x256xf32>, vector<8x256xf32> -> vector<8x256xf32>
    %68 = arith.addf %59, %67 : vector<8x256xf32>
    %c239_i32 = arith.constant 239 : i32
    %69 = tpu.dynamic_rotate %2 by %c239_i32 dim 1 : vector<4x256xf32>, i32 -> vector<4x256xf32>
    %70 = vector.extract_strided_slice %0 {offsets = [8, 0, 0], sizes = [1, 1, 256], strides = [1, 1, 1]} : vector<9x1x256xf32> to vector<1x1x256xf32>
    %71 = vector.shape_cast %70 : vector<1x1x256xf32> to vector<1x256xf32>
    %72 = vector.broadcast %71 : vector<1x256xf32> to vector<4x256xf32>
    %73 = arith.mulf %69, %72 : vector<4x256xf32>
    %c8 = arith.constant 8 : index
    %c0_29 = arith.constant 0 : index
    %c0_30 = arith.constant 0 : index
    %74 = vector.load %arg2[%c8, %c0_29, %c0_30] : memref<9x8x4xf32, #tpu.memory_space<vmem>>, vector<1x8x4xf32>
    %75 = vector.shape_cast %74 : vector<1x8x4xf32> to vector<8x4xf32>
    %cst_31 = arith.constant dense<0.000000e+00> : vector<8x256xf32>
    %76 = tpu.matmul %75, %73, %cst_31 {dimension_numbers = #tpu.dot_dimension_numbers<[1], [0], [0], [1], [0, 0, 1, 1], [], []>} : vector<8x4xf32>, vector<4x256xf32>, vector<8x256xf32> -> vector<8x256xf32>
    %77 = arith.addf %68, %76 : vector<8x256xf32>
    %c0_32 = arith.constant 0 : index
    %c0_33 = arith.constant 0 : index
    %78 = vector.load %arg3[%c0_32, %c0_33] : memref<8x1xf32, #tpu.memory_space<vmem>>, vector<8x1xf32>
    %79 = vector.broadcast %78 : vector<8x1xf32> to vector<8x256xf32>
    %80 = arith.addf %77, %79 : vector<8x256xf32>
    %81 = vector.extract_strided_slice %80 {offsets = [0, 0], sizes = [4, 256], strides = [1, 1]} : vector<8x256xf32> to vector<4x256xf32>
    %82 = vector.extract_strided_slice %80 {offsets = [4, 0], sizes = [4, 256], strides = [1, 1]} : vector<8x256xf32> to vector<4x256xf32>
    %83 = arith.maximumf %81, %82 : vector<4x256xf32>
    %c17_i32_34 = arith.constant 17 : i32
    %84 = tpu.dynamic_rotate %83 by %c17_i32_34 dim 1 : vector<4x256xf32>, i32 -> vector<4x256xf32>
    %85 = vector.extract_strided_slice %0 {offsets = [0, 0, 0], sizes = [1, 1, 256], strides = [1, 1, 1]} : vector<9x1x256xf32> to vector<1x1x256xf32>
    %86 = vector.shape_cast %85 : vector<1x1x256xf32> to vector<1x256xf32>
    %87 = vector.broadcast %86 : vector<1x256xf32> to vector<4x256xf32>
    %88 = arith.mulf %84, %87 : vector<4x256xf32>
    %c0_35 = arith.constant 0 : index
    %c0_36 = arith.constant 0 : index
    %c0_37 = arith.constant 0 : index
    %89 = vector.load %arg4[%c0_35, %c0_36, %c0_37] : memref<9x8x4xf32, #tpu.memory_space<vmem>>, vector<1x8x4xf32>
    %90 = vector.shape_cast %89 : vector<1x8x4xf32> to vector<8x4xf32>
    %cst_38 = arith.constant dense<0.000000e+00> : vector<8x256xf32>
    %91 = tpu.matmul %90, %88, %cst_38 {dimension_numbers = #tpu.dot_dimension_numbers<[1], [0], [0], [1], [0, 0, 1, 1], [], []>} : vector<8x4xf32>, vector<4x256xf32>, vector<8x256xf32> -> vector<8x256xf32>
    %c16_i32_39 = arith.constant 16 : i32
    %92 = tpu.dynamic_rotate %83 by %c16_i32_39 dim 1 : vector<4x256xf32>, i32 -> vector<4x256xf32>
    %93 = vector.extract_strided_slice %0 {offsets = [1, 0, 0], sizes = [1, 1, 256], strides = [1, 1, 1]} : vector<9x1x256xf32> to vector<1x1x256xf32>
    %94 = vector.shape_cast %93 : vector<1x1x256xf32> to vector<1x256xf32>
    %95 = vector.broadcast %94 : vector<1x256xf32> to vector<4x256xf32>
    %96 = arith.mulf %92, %95 : vector<4x256xf32>
    %c1_40 = arith.constant 1 : index
    %c0_41 = arith.constant 0 : index
    %c0_42 = arith.constant 0 : index
    %97 = vector.load %arg4[%c1_40, %c0_41, %c0_42] : memref<9x8x4xf32, #tpu.memory_space<vmem>>, vector<1x8x4xf32>
    %98 = vector.shape_cast %97 : vector<1x8x4xf32> to vector<8x4xf32>
    %cst_43 = arith.constant dense<0.000000e+00> : vector<8x256xf32>
    %99 = tpu.matmul %98, %96, %cst_43 {dimension_numbers = #tpu.dot_dimension_numbers<[1], [0], [0], [1], [0, 0, 1, 1], [], []>} : vector<8x4xf32>, vector<4x256xf32>, vector<8x256xf32> -> vector<8x256xf32>
    %100 = arith.addf %91, %99 : vector<8x256xf32>
    %c15_i32_44 = arith.constant 15 : i32
    %101 = tpu.dynamic_rotate %83 by %c15_i32_44 dim 1 : vector<4x256xf32>, i32 -> vector<4x256xf32>
    %102 = vector.extract_strided_slice %0 {offsets = [2, 0, 0], sizes = [1, 1, 256], strides = [1, 1, 1]} : vector<9x1x256xf32> to vector<1x1x256xf32>
    %103 = vector.shape_cast %102 : vector<1x1x256xf32> to vector<1x256xf32>
    %104 = vector.broadcast %103 : vector<1x256xf32> to vector<4x256xf32>
    %105 = arith.mulf %101, %104 : vector<4x256xf32>
    %c2_45 = arith.constant 2 : index
    %c0_46 = arith.constant 0 : index
    %c0_47 = arith.constant 0 : index
    %106 = vector.load %arg4[%c2_45, %c0_46, %c0_47] : memref<9x8x4xf32, #tpu.memory_space<vmem>>, vector<1x8x4xf32>
    %107 = vector.shape_cast %106 : vector<1x8x4xf32> to vector<8x4xf32>
    %cst_48 = arith.constant dense<0.000000e+00> : vector<8x256xf32>
    %108 = tpu.matmul %107, %105, %cst_48 {dimension_numbers = #tpu.dot_dimension_numbers<[1], [0], [0], [1], [0, 0, 1, 1], [], []>} : vector<8x4xf32>, vector<4x256xf32>, vector<8x256xf32> -> vector<8x256xf32>
    %109 = arith.addf %100, %108 : vector<8x256xf32>
    %c1_i32_49 = arith.constant 1 : i32
    %110 = tpu.dynamic_rotate %83 by %c1_i32_49 dim 1 : vector<4x256xf32>, i32 -> vector<4x256xf32>
    %111 = vector.extract_strided_slice %0 {offsets = [3, 0, 0], sizes = [1, 1, 256], strides = [1, 1, 1]} : vector<9x1x256xf32> to vector<1x1x256xf32>
    %112 = vector.shape_cast %111 : vector<1x1x256xf32> to vector<1x256xf32>
    %113 = vector.broadcast %112 : vector<1x256xf32> to vector<4x256xf32>
    %114 = arith.mulf %110, %113 : vector<4x256xf32>
    %c3_50 = arith.constant 3 : index
    %c0_51 = arith.constant 0 : index
    %c0_52 = arith.constant 0 : index
    %115 = vector.load %arg4[%c3_50, %c0_51, %c0_52] : memref<9x8x4xf32, #tpu.memory_space<vmem>>, vector<1x8x4xf32>
    %116 = vector.shape_cast %115 : vector<1x8x4xf32> to vector<8x4xf32>
    %cst_53 = arith.constant dense<0.000000e+00> : vector<8x256xf32>
    %117 = tpu.matmul %116, %114, %cst_53 {dimension_numbers = #tpu.dot_dimension_numbers<[1], [0], [0], [1], [0, 0, 1, 1], [], []>} : vector<8x4xf32>, vector<4x256xf32>, vector<8x256xf32> -> vector<8x256xf32>
    %118 = arith.addf %109, %117 : vector<8x256xf32>
    %c4_54 = arith.constant 4 : index
    %c0_55 = arith.constant 0 : index
    %c0_56 = arith.constant 0 : index
    %119 = vector.load %arg4[%c4_54, %c0_55, %c0_56] : memref<9x8x4xf32, #tpu.memory_space<vmem>>, vector<1x8x4xf32>
    %120 = vector.shape_cast %119 : vector<1x8x4xf32> to vector<8x4xf32>
    %cst_57 = arith.constant dense<0.000000e+00> : vector<8x256xf32>
    %121 = tpu.matmul %120, %83, %cst_57 {dimension_numbers = #tpu.dot_dimension_numbers<[1], [0], [0], [1], [0, 0, 1, 1], [], []>} : vector<8x4xf32>, vector<4x256xf32>, vector<8x256xf32> -> vector<8x256xf32>
    %122 = arith.addf %118, %121 : vector<8x256xf32>
    %c255_i32_58 = arith.constant 255 : i32
    %123 = tpu.dynamic_rotate %83 by %c255_i32_58 dim 1 : vector<4x256xf32>, i32 -> vector<4x256xf32>
    %124 = vector.extract_strided_slice %0 {offsets = [5, 0, 0], sizes = [1, 1, 256], strides = [1, 1, 1]} : vector<9x1x256xf32> to vector<1x1x256xf32>
    %125 = vector.shape_cast %124 : vector<1x1x256xf32> to vector<1x256xf32>
    %126 = vector.broadcast %125 : vector<1x256xf32> to vector<4x256xf32>
    %127 = arith.mulf %123, %126 : vector<4x256xf32>
    %c5_59 = arith.constant 5 : index
    %c0_60 = arith.constant 0 : index
    %c0_61 = arith.constant 0 : index
    %128 = vector.load %arg4[%c5_59, %c0_60, %c0_61] : memref<9x8x4xf32, #tpu.memory_space<vmem>>, vector<1x8x4xf32>
    %129 = vector.shape_cast %128 : vector<1x8x4xf32> to vector<8x4xf32>
    %cst_62 = arith.constant dense<0.000000e+00> : vector<8x256xf32>
    %130 = tpu.matmul %129, %127, %cst_62 {dimension_numbers = #tpu.dot_dimension_numbers<[1], [0], [0], [1], [0, 0, 1, 1], [], []>} : vector<8x4xf32>, vector<4x256xf32>, vector<8x256xf32> -> vector<8x256xf32>
    %131 = arith.addf %122, %130 : vector<8x256xf32>
    %c241_i32_63 = arith.constant 241 : i32
    %132 = tpu.dynamic_rotate %83 by %c241_i32_63 dim 1 : vector<4x256xf32>, i32 -> vector<4x256xf32>
    %133 = vector.extract_strided_slice %0 {offsets = [6, 0, 0], sizes = [1, 1, 256], strides = [1, 1, 1]} : vector<9x1x256xf32> to vector<1x1x256xf32>
    %134 = vector.shape_cast %133 : vector<1x1x256xf32> to vector<1x256xf32>
    %135 = vector.broadcast %134 : vector<1x256xf32> to vector<4x256xf32>
    %136 = arith.mulf %132, %135 : vector<4x256xf32>
    %c6_64 = arith.constant 6 : index
    %c0_65 = arith.constant 0 : index
    %c0_66 = arith.constant 0 : index
    %137 = vector.load %arg4[%c6_64, %c0_65, %c0_66] : memref<9x8x4xf32, #tpu.memory_space<vmem>>, vector<1x8x4xf32>
    %138 = vector.shape_cast %137 : vector<1x8x4xf32> to vector<8x4xf32>
    %cst_67 = arith.constant dense<0.000000e+00> : vector<8x256xf32>
    %139 = tpu.matmul %138, %136, %cst_67 {dimension_numbers = #tpu.dot_dimension_numbers<[1], [0], [0], [1], [0, 0, 1, 1], [], []>} : vector<8x4xf32>, vector<4x256xf32>, vector<8x256xf32> -> vector<8x256xf32>
    %140 = arith.addf %131, %139 : vector<8x256xf32>
    %c240_i32_68 = arith.constant 240 : i32
    %141 = tpu.dynamic_rotate %83 by %c240_i32_68 dim 1 : vector<4x256xf32>, i32 -> vector<4x256xf32>
    %142 = vector.extract_strided_slice %0 {offsets = [7, 0, 0], sizes = [1, 1, 256], strides = [1, 1, 1]} : vector<9x1x256xf32> to vector<1x1x256xf32>
    %143 = vector.shape_cast %142 : vector<1x1x256xf32> to vector<1x256xf32>
    %144 = vector.broadcast %143 : vector<1x256xf32> to vector<4x256xf32>
    %145 = arith.mulf %141, %144 : vector<4x256xf32>
    %c7_69 = arith.constant 7 : index
    %c0_70 = arith.constant 0 : index
    %c0_71 = arith.constant 0 : index
    %146 = vector.load %arg4[%c7_69, %c0_70, %c0_71] : memref<9x8x4xf32, #tpu.memory_space<vmem>>, vector<1x8x4xf32>
    %147 = vector.shape_cast %146 : vector<1x8x4xf32> to vector<8x4xf32>
    %cst_72 = arith.constant dense<0.000000e+00> : vector<8x256xf32>
    %148 = tpu.matmul %147, %145, %cst_72 {dimension_numbers = #tpu.dot_dimension_numbers<[1], [0], [0], [1], [0, 0, 1, 1], [], []>} : vector<8x4xf32>, vector<4x256xf32>, vector<8x256xf32> -> vector<8x256xf32>
    %149 = arith.addf %140, %148 : vector<8x256xf32>
    %c239_i32_73 = arith.constant 239 : i32
    %150 = tpu.dynamic_rotate %83 by %c239_i32_73 dim 1 : vector<4x256xf32>, i32 -> vector<4x256xf32>
    %151 = vector.extract_strided_slice %0 {offsets = [8, 0, 0], sizes = [1, 1, 256], strides = [1, 1, 1]} : vector<9x1x256xf32> to vector<1x1x256xf32>
    %152 = vector.shape_cast %151 : vector<1x1x256xf32> to vector<1x256xf32>
    %153 = vector.broadcast %152 : vector<1x256xf32> to vector<4x256xf32>
    %154 = arith.mulf %150, %153 : vector<4x256xf32>
    %c8_74 = arith.constant 8 : index
    %c0_75 = arith.constant 0 : index
    %c0_76 = arith.constant 0 : index
    %155 = vector.load %arg4[%c8_74, %c0_75, %c0_76] : memref<9x8x4xf32, #tpu.memory_space<vmem>>, vector<1x8x4xf32>
    %156 = vector.shape_cast %155 : vector<1x8x4xf32> to vector<8x4xf32>
    %cst_77 = arith.constant dense<0.000000e+00> : vector<8x256xf32>
    %157 = tpu.matmul %156, %154, %cst_77 {dimension_numbers = #tpu.dot_dimension_numbers<[1], [0], [0], [1], [0, 0, 1, 1], [], []>} : vector<8x4xf32>, vector<4x256xf32>, vector<8x256xf32> -> vector<8x256xf32>
    %158 = arith.addf %149, %157 : vector<8x256xf32>
    %c0_78 = arith.constant 0 : index
    %c0_79 = arith.constant 0 : index
    %159 = vector.load %arg5[%c0_78, %c0_79] : memref<8x1xf32, #tpu.memory_space<vmem>>, vector<8x1xf32>
    %160 = vector.broadcast %159 : vector<8x1xf32> to vector<8x256xf32>
    %161 = arith.addf %158, %160 : vector<8x256xf32>
    %162 = vector.extract_strided_slice %161 {offsets = [0, 0], sizes = [4, 256], strides = [1, 1]} : vector<8x256xf32> to vector<4x256xf32>
    %163 = vector.extract_strided_slice %161 {offsets = [4, 0], sizes = [4, 256], strides = [1, 1]} : vector<8x256xf32> to vector<4x256xf32>
    %164 = arith.maximumf %162, %163 : vector<4x256xf32>
    %165 = arith.addf %164, %2 : vector<4x256xf32>
    %c0_80 = arith.constant 0 : index
    %c0_81 = arith.constant 0 : index
    %c0_82 = arith.constant 0 : index
    %166 = vector.load %arg7[%c0_80, %c0_81, %c0_82] : memref<1x4x256xf32, #tpu.memory_space<vmem>>, vector<1x4x256xf32>
    %167 = vector.shape_cast %166 : vector<1x4x256xf32> to vector<4x256xf32>
    %168 = vector.shape_cast %165 : vector<4x256xf32> to vector<1x4x256xf32>
    tpu.vector_store %arg7[%c0_80, %c0_81, %c0_82], %168 {strides = array<i32>} : memref<1x4x256xf32, #tpu.memory_space<vmem>>, vector<1x4x256xf32>,
    return
  }
  func.func @transform_0(%arg0: i32) -> (i32, i32, i32) {
    %c0_i32 = arith.constant 0 : i32
    %c0_i32_0 = arith.constant 0 : i32
    %c0_i32_1 = arith.constant 0 : i32
    return %arg0, %c0_i32, %c0_i32_0 : i32, i32, i32
  }
  func.func @transform_1(%arg0: i32) -> (i32, i32, i32) {
    %c0_i32 = arith.constant 0 : i32
    %c0_i32_0 = arith.constant 0 : i32
    %c0_i32_1 = arith.constant 0 : i32
    %c0_i32_2 = arith.constant 0 : i32
    return %c0_i32, %c0_i32_0, %c0_i32_1 : i32, i32, i32
  }
  func.func @transform_2(%arg0: i32) -> (i32, i32) {
    %c0_i32 = arith.constant 0 : i32
    %c0_i32_0 = arith.constant 0 : i32
    %c0_i32_1 = arith.constant 0 : i32
    return %c0_i32, %c0_i32_0 : i32, i32
  }
  func.func @transform_3(%arg0: i32) -> (i32, i32, i32) {
    %c0_i32 = arith.constant 0 : i32
    %c0_i32_0 = arith.constant 0 : i32
    %c0_i32_1 = arith.constant 0 : i32
    %c0_i32_2 = arith.constant 0 : i32
    return %c0_i32, %c0_i32_0, %c0_i32_1 : i32, i32, i32
  }
  func.func @transform_4(%arg0: i32) -> (i32, i32) {
    %c0_i32 = arith.constant 0 : i32
    %c0_i32_0 = arith.constant 0 : i32
    %c0_i32_1 = arith.constant 0 : i32
    return %c0_i32, %c0_i32_0 : i32, i32
  }
  func.func @transform_5(%arg0: i32) -> (i32, i32, i32) {
    %c0_i32 = arith.constant 0 : i32
    %c0_i32_0 = arith.constant 0 : i32
    %c0_i32_1 = arith.constant 0 : i32
    %c0_i32_2 = arith.constant 0 : i32
    return %c0_i32, %c0_i32_0, %c0_i32_1 : i32, i32, i32
  }
  func.func @transform_6(%arg0: i32) -> (i32, i32, i32) {
    %c0_i32 = arith.constant 0 : i32
    %c0_i32_0 = arith.constant 0 : i32
    %c0_i32_1 = arith.constant 0 : i32
    return %arg0, %c0_i32, %c0_i32_0 : i32, i32, i32
  }
}

</mosaic_0001>

<bundles_post_ra>
// kernel: resblock_v1_forward.1
= control target key start
LH: loop header
LB: loop body
LE: loop exit
PB: predicated region body
PF: predicated region fallthrough
CT: control target
= control target key end

     0   :  { %s2274_s21 = smov 0   ;;  %s2681_s0 = inlined_call_operand.vmem [shape: f32[2,4,256], index: 0, kind: input, shape index: {}]   ;;  %s2682_s1 = inlined_call_operand.vmem [shape: f32[9,8,4], index: 1, kind: input, shape index: {}]   ;;  %s2683_s2 = inlined_call_operand.vmem [shape: f32[8,1], index: 2, kind: input, shape index: {}]   ;;  %s2684_s3 = inlined_call_operand.vmem [shape: f32[9,8,4], index: 3, kind: input, shape index: {}]   ;;  %s2685_s4 = inlined_call_operand.vmem [shape: f32[8,1], index: 4, kind: input, shape index: {}]   ;;  %s2686_s5 = inlined_call_operand.vmem [shape: f32[9,1,256], index: 5, kind: input, shape index: {}]   ;;  %s2687_s6 = inlined_call_operand.vmem [shape: f32[2,4,256], index: 6, kind: output, shape index: {}]  }
   0x1 LB: > { %s2086_s22 = sadd.s32 4294967295, %s2227_s21   ;;  %p2090_p0 = scmp.ge.s32.totalorder %s2227_s21, 1  ;;  %s2227_s21 = sphi %s2274_s21, %s16_s21  }
   0x2   : > { %p212_p1 = scmp.lt.s32.totalorder %s2227_s21, 3 }
   0x4   : > { %p213_p2 = pnand %p2090_p0, %p212_p1 }
   0x5   : > { %p242_p3 = scmp.lt.s32.totalorder (!%p213_p2), %s2086_s22, 1  ;;  %v2229_v0 = vmov (!%p213_p2), 0.0   ;;  %s2230_s27 = smov (!%p213_p2), 17   ;;  %v1177_v3 = vld [vmem:[%s2683_s2] sm:$0xff] (!%p213_p2)  ;;  %v2238_v4 = vmov (!%p213_p2), 0   ;;  %v268_v5 = vlaneseq (!%p213_p2)  ;;  %vm313_vm2 = vcmask (!%p213_p2), 1043456  }
   0x6   : > { %216 = sbr.rel (%p213_p2) target bundleno = 835 (0x343), region = 44  ;;  %384 = vmatprep.mubr.f32.mxu0 (!%p213_p2), %v2229_v0  ;;  %1285 = vmatprep.mubr.f32.mxu1 (!%p213_p2), %v2229_v0  ;;  %s2231_s28 = smov (!%p213_p2), 16   ;;  %v252_v10 = vld [vmem:[%s2686_s5] sm:$0x3] (!%p213_p2)  ;;  %v253_v11 = vld [vmem:[%s2686_s5 + $0x2] sm:$0x3] (!%p213_p2) }
   0x7   : > { %s2232_s29 = smov (!%p213_p2), 15   ;;  %s2233_s30 = smov (!%p213_p2), 1   ;;  %2219 = vset.pattern.permute.xlu0 (!%p213_p2), %v2238_v4  ;;  %v275_v6 = vshrl.u32 (!%p213_p2), %v268_v5, 7  ;;  %v2333_v7 = vand.u32 (!%p213_p2), 127, %v268_v5  ;;  %v254_v18 = vld [vmem:[%s2686_s5 + $0x4] sm:$0x3] (!%p213_p2) }
   0x8   : > { %s2234_s7 = smov (!%p213_p2), 127   ;;  %s2235_s8 = smov (!%p213_p2), 113   ;;  %v2095_v30 = vld [vmem:[%s2682_s1 + $0x8] sm:$0xff] (!%p213_p2)  ;;  %vm309_vm4 = vcmask (!%p213_p2), 31744   ;;  %v255_v34 = vld [vmem:[%s2686_s5 + $0x6] sm:$0x3] (!%p213_p2) }
   0x9   : > { %s2236_s9 = smov (!%p213_p2), 112   ;;  %s2237_s10 = smov (!%p213_p2), 111   ;;  %v2335_v8 = vsub.s32 (!%p213_p2), 0, %v275_v6  ;;  %v2337_v9 = vsub.s32 (!%p213_p2), 1, %v275_v6  ;;  %vm270_vm0 = vcmp.lt.s32.totalorder (!%p213_p2), %v2333_v7, 17  ;;  %vm291_vm1 = vcmp.lt.s32.totalorder (!%p213_p2), %v2333_v7, 16 }
   0xa   : > { %vm475_vm3 = vcmp.lt.s32.totalorder (!%p213_p2), %v2333_v7, 15  ;;  %vm579_vm5 = vcmp.lt.s32.totalorder (!%p213_p2), %v2333_v7, 1  ;;  %v286_v43 = vld [vmem:[%s2682_s1] sm:$0xff] (!%p213_p2)  ;;  %v2102_v48 = vld [vmem:[%s2682_s1 + $0x10] sm:$0xff] (!%p213_p2)  ;;  %v256_v49 = vld [vmem:[%s2686_s5 + $0xa] sm:$0x3] (!%p213_p2) }
   0xb   : > { %v2347_v14 = vrot.slane (!%p213_p2), %v252_v10, %v2337_v9  ;;  %v2351_v15 = vrot.slane (!%p213_p2), %v253_v11, %v2335_v8  ;;  %v2354_v16 = vrot.slane (!%p213_p2), %v253_v11, %v2337_v9  ;;  %v2357_v17 = vrot.slane (!%p213_p2), %v252_v10, %v2335_v8  ;;  %v2106_v54 = vld [vmem:[%s2682_s1 + $0x18] sm:$0xff] (!%p213_p2)  ;;  %v257_v56 = vld [vmem:[%s2686_s5 + $0xc] sm:$0x3] (!%p213_p2)  ;;  %v258_v5 = vld [vmem:[%s2686_s5 + $0xe] sm:$0x3] (!%p213_p2) }
   0xc   : > { %v2375_v28 = vrot.slane (!%p213_p2), %v254_v18, %v2337_v9  ;;  %v2394_v36 = vrot.slane (!%p213_p2), %v254_v18, %v2335_v8  ;;  %v2401_v39 = vrot.slane (!%p213_p2), %v255_v34, %v2337_v9  ;;  %v2413_v45 = vrot.slane (!%p213_p2), %v255_v34, %v2335_v8 }
   0xd   : > { %s2689_s22 = smov (!%p242_p3, %s2086_s22), 1  ;;  %vm765_vm6 = vcmp.lt.s32.totalorder %v2333_v7, 127  ;;  %v2433_v52 = vrot.slane %v256_v49, %v2337_v9  ;;  %vm869_vm7 = vcmp.lt.s32.totalorder %v2333_v7, 113  ;;  %v2449_v59 = vrot.slane %v256_v49, %v2335_v8 }
   0xe   : > { %s2167_s23 = sshll.u32 %s2689_s22, 3  ;;  %v2456_v61 = vrot.slane %v257_v56, %v2337_v9  ;;  %vm973_vm8 = vcmp.lt.s32.totalorder %v2333_v7, 112  ;;  %v2472_v11 = vrot.slane %v257_v56, %v2335_v8  ;;  %vm1077_vm9 = vcmp.lt.s32.totalorder %v2333_v7, 111 }
   0xf   : > { %s246_s26 = scalar_lea.vmem %s2681_s0, %s2167_s23 }
  0x10   : > { %v2292_v1 = vld [vmem:[%s246_s26] sm:$0xff] }
  0x11   : > { %264 = vrot.lane.b32.xlu1 %v2292_v1, %s2230_s27  ;;  %287 = vrot.lane.b32.xlu0 %v2292_v1, %s2231_s28  ;;  %v2300_v2 = vcombine.high %v2292_v1, %v2292_v1 }
  0x15   : > { %266 = vrot.lane.b32.xlu1 %v2300_v2, %s2230_s27  ;;  %289 = vrot.lane.b32.xlu0 %v2300_v2, %s2231_s28 }
  0x19   : > { %473 = vrot.lane.b32.xlu1 %v2300_v2, %s2232_s29  ;;  %471 = vrot.lane.b32.xlu0 %v2292_v1, %s2232_s29 }
  0x1d   : > { %577 = vrot.lane.b32.xlu1 %v2300_v2, %s2233_s30  ;;  %575 = vrot.lane.b32.xlu0 %v2292_v1, %s2233_s30 }
  0x21   : > { %763 = vrot.lane.b32.xlu1 %v2300_v2, %s2234_s7  ;;  %761 = vrot.lane.b32.xlu0 %v2292_v1, %s2234_s7 }
  0x25   : > { %867 = vrot.lane.b32.xlu1 %v2300_v2, %s2235_s8  ;;  %865 = vrot.lane.b32.xlu0 %v2292_v1, %s2235_s8 }
  0x29   : > { %971 = vrot.lane.b32.xlu1 %v2300_v2, %s2236_s9  ;;  %969 = vrot.lane.b32.xlu0 %v2292_v1, %s2236_s9 }
  0x2d   : > { %1075 = vrot.lane.b32.xlu1 %v2300_v2, %s2237_s10  ;;  %1073 = vrot.lane.b32.xlu0 %v2292_v1, %s2237_s10 }
  0x31   : > { %1180 = vperm.xlu0 %2219, %v1177_v3   ;;  %v2110_v3 = vld [vmem:[%s2682_s1 + $0x20] sm:$0xff] }
  0x83   : > { %v265_v12 = vpop.permute.xlu1 %264  ;;  %v288_v13 = vpop.permute.xlu0 %287 }
  0x87   : > { %v267_v19 = vpop.permute.xlu1 %266  ;;  %v290_v20 = vpop.permute.xlu0 %289 }
  0x88   : > { %v271_v21 = vsel %vm270_vm0, %v265_v12, %v267_v19  ;;  %v272_v22 = vsel %vm270_vm0, %v267_v19, %v265_v12  ;;  %v292_v23 = vsel %vm291_vm1, %v288_v13, %v290_v20  ;;  %v293_v24 = vsel %vm291_vm1, %v290_v20, %v288_v13  ;;  %v2114_v20 = vld [vmem:[%s2682_s1 + $0x28] sm:$0xff] }
  0x89   : > { %v285_v25 = vmul.f32 %v2347_v14, %v271_v21  ;;  %v305_v26 = vmul.f32 %v2351_v15, %v293_v24  ;;  %v306_v27 = vmul.f32 %v2354_v16, %v292_v23  ;;  %v284_v29 = vmul.f32 %v2357_v17, %v272_v22  ;;  %v259_v22 = vld [vmem:[%s2686_s5 + $0x10] sm:$0x3] }
  0x8a   : > { %v2479_v13 = vrot.slane %v258_v5, %v2337_v9 }
  0x8b   : > { %2096 = vmatprep.subr.msk.mxu0 %vm313_vm2, %v306_v27  ;;  %v474_v31 = vpop.permute.xlu1 %473  ;;  %v472_v32 = vpop.permute.xlu0 %471  ;;  %v2502_v27 = vrot.slane %v259_v22, %v2337_v9 }
  0x8c   : > { %2097 = vmatpush1.msk.msra.mxu0 %vm313_vm2, %v305_v26  ;;  %v476_v33 = vsel %vm475_vm3, %v472_v32, %v474_v31  ;;  %v477_v37 = vsel %vm475_vm3, %v474_v31, %v472_v32  ;;  %v2118_v31 = vld [vmem:[%s2682_s1 + $0x30] sm:$0xff] }
  0x8d   : > { %2098 = vmatmul.mubr.msk.f32.vlgmr.msra.gmra.mrb[0].mxu0 %vm309_vm4, %v2095_v30  ;;  %2099 = vmatprep.subr.msk.mxu0 %vm313_vm2, %v285_v25  ;;  %v490_v35 = vmul.f32 %v2375_v28, %v476_v33  ;;  %v489_v42 = vmul.f32 %v2394_v36, %v477_v37  ;;  %v2495_v25 = vrot.slane %v258_v5, %v2335_v8 }
  0x8e   : > { %2100 = vmatpush1.msk.msra.mxu0 %vm313_vm2, %v284_v29  ;;  %464 = vmatprep.mubr.f32.mxu0 %v2229_v0  ;;  %v2514_v33 = vrot.slane %v259_v22, %v2335_v8  ;;  %v2126_v8 = vld [vmem:[%s2682_s1 + $0x40] sm:$0xff] }
  0x8f   : > { %2103 = vmatprep.subr.msk.mxu0 %vm313_vm2, %v490_v35  ;;  %v578_v38 = vpop.permute.xlu1 %577  ;;  %v576_v40 = vpop.permute.xlu0 %575  ;;  %v2122_v35 = vld [vmem:[%s2682_s1 + $0x38] sm:$0xff] }
  0x90   : > { %v580_v41 = vsel %vm579_vm5, %v576_v40, %v578_v38  ;;  %v581_v46 = vsel %vm579_vm5, %v578_v38, %v576_v40 }
  0x91   : > { %v594_v44 = vmul.f32 %v2401_v39, %v580_v41  ;;  %v593_v47 = vmul.f32 %v2413_v45, %v581_v46 }
  0x93   : > { %v764_v50 = vpop.permute.xlu1 %763  ;;  %v762_v51 = vpop.permute.xlu0 %761 }
  0x94   : > { %v767_v53 = vsel %vm765_vm6, %v764_v50, %v762_v51  ;;  %v766_v60 = vsel %vm765_vm6, %v762_v51, %v764_v50 }
  0x95   : > { %2101 = vmatmul.mubr.msk.f32.vlgmr.msra.gmra.mrb[0].mxu0 %vm309_vm4, %v286_v43  ;;  %v780_v55 = vmul.f32 %v2433_v52, %v767_v53  ;;  %v779_v63 = vmul.f32 %v2449_v59, %v766_v60 }
  0x96   : > { %2104 = vmatpush1.msk.msra.mxu0 %vm313_vm2, %v489_v42  ;;  %566 = vmatprep.mubr.f32.mxu0 %v2229_v0 }
  0x97   : > { %2107 = vmatprep.subr.msk.mxu0 %vm313_vm2, %v594_v44  ;;  %v868_v57 = vpop.permute.xlu1 %867  ;;  %v866_v58 = vpop.permute.xlu0 %865 }
  0x98   : > { %v871_v62 = vsel %vm869_vm7, %v868_v57, %v866_v58  ;;  %v870_v12 = vsel %vm869_vm7, %v866_v58, %v868_v57  ;;  %v2130_v57 = vld [vmem:[%s2684_s3 + $0x8] sm:$0xff] }
  0x99   : > { %v884_v4 = vmul.f32 %v2456_v61, %v871_v62  ;;  %v883_v19 = vmul.f32 %v2472_v11, %v870_v12 }
  0x9b   : > { %v972_v6 = vpop.permute.xlu1 %971  ;;  %v970_v10 = vpop.permute.xlu0 %969 }
  0x9c   : > { %v975_v18 = vsel %vm973_vm8, %v972_v6, %v970_v10  ;;  %v974_v26 = vsel %vm973_vm8, %v970_v10, %v972_v6 }
  0x9d   : > { %2105 = vmatmul.mubr.msk.f32.vlgmr.msra.gmra.mrb[0].mxu0 %vm309_vm4, %v2102_v48  ;;  %v988_v21 = vmul.f32 %v2479_v13, %v975_v18  ;;  %v987_v30 = vmul.f32 %v2495_v25, %v974_v26  ;;  %v2008_v48 = vld [vmem:[%s2685_s4] sm:$0xff] }
  0x9e   : > { %2108 = vmatpush1.msk.msra.mxu0 %vm313_vm2, %v593_v47  ;;  %670 = vmatprep.mubr.f32.mxu0 %v2229_v0 }
  0x9f   : > { %2111 = vmatprep.subr.msk.mxu0 %vm313_vm2, %v2300_v2  ;;  %v1076_v23 = vpop.permute.xlu1 %1075  ;;  %v1074_v24 = vpop.permute.xlu0 %1073 }
  0xa0   : > { %v1079_v29 = vsel %vm1077_vm9, %v1076_v23, %v1074_v24  ;;  %v1078_v9 = vsel %vm1077_vm9, %v1074_v24, %v1076_v23  ;;  %v2141_v23 = vld [vmem:[%s2684_s3 + $0x18] sm:$0xff] }
  0xa1   : > { %v1092_v32 = vmul.f32 %v2502_v27, %v1079_v29  ;;  %v1091_v34 = vmul.f32 %v2514_v33, %v1078_v9 }
  0xa5   : > { %2109 = vmatmul.mubr.msk.f32.vlgmr.msra.gmra.mrb[0].mxu0 %vm309_vm4, %v2106_v54 }
  0xa6   : > { %2112 = vmatpush1.msk.msra.mxu0 %vm313_vm2, %v2292_v1  ;;  %752 = vmatprep.mubr.f32.mxu0 %v2229_v0 }
  0xa7   : > { %2115 = vmatprep.subr.msk.mxu0 %vm313_vm2, %v780_v55 }
  0xad   : > { %2113 = vmatmul.mubr.msk.f32.vlgmr.msra.gmra.mrb[0].mxu0 %vm309_vm4, %v2110_v3 }
  0xae   : > { %2116 = vmatpush1.msk.msra.mxu0 %vm313_vm2, %v779_v63  ;;  %856 = vmatprep.mubr.f32.mxu0 %v2229_v0 }
  0xaf   : > { %2119 = vmatprep.subr.msk.mxu0 %vm313_vm2, %v884_v4 }
  0xb0   : > { %v1181_v37 = vpop.permute.xlu0 %1180 }
  0xb5   : > { %2117 = vmatmul.mubr.msk.f32.vlgmr.msra.gmra.mrb[0].mxu0 %vm309_vm4, %v2114_v20 }
  0xb6   : > { %2120 = vmatpush1.msk.msra.mxu0 %vm313_vm2, %v883_v19  ;;  %960 = vmatprep.mubr.f32.mxu0 %v2229_v0 }
  0xb7   : > { %2123 = vmatprep.subr.msk.mxu0 %vm313_vm2, %v988_v21 }
  0xbd   : > { %2121 = vmatmul.mubr.msk.f32.vlgmr.msra.gmra.mrb[0].mxu0 %vm309_vm4, %v2118_v31 }
  0xbe   : > { %2124 = vmatpush1.msk.msra.mxu0 %vm313_vm2, %v987_v30  ;;  %1064 = vmatprep.mubr.f32.mxu0 %v2229_v0 }
  0xbf   : > { %2127 = vmatprep.subr.msk.mxu0 %vm313_vm2, %v1092_v32 }
  0xc5   : > { %2125 = vmatmul.mubr.msk.f32.vlgmr.msra.gmra.mrb[0].mxu0 %vm309_vm4, %v2122_v35 }
  0xc6   : > { %2128 = vmatpush1.msk.msra.mxu0 %vm313_vm2, %v1091_v34  ;;  %1168 = vmatprep.mubr.f32.mxu0 %v2229_v0 }
  0xcd   : > { %2129 = vmatmul.mubr.msk.f32.vlgmr.msra.gmra.mrb[0].mxu0 %vm309_vm4, %v2126_v8 }
 0x1a0   : > { %v1170_v38 = vpop.f32.mrb[0].mxu0 }
 0x1a1   : > { %v1183_v40 = vadd.f32 %v1181_v37, %v1170_v38  ;;  %v1172_v41 = vpop.f32.mrb[1].mxu0 }
 0x1a2   : > { %v1184_v42 = vadd.f32 %v1181_v37, %v1172_v41 }
 0x1a3   : > { %v1187_v43 = vrot.slane %v1183_v40, 4 }
 0x1a4   : > { %v1188_v46 = vrot.slane %v1184_v42, 4 }
 0x1a5   : > { %v2531_v44 = vmax.f32 %v1183_v40, %v1187_v43 }
 0x1a6   : > { %v1192_v47 = vmax.f32 %v1184_v42, %v1188_v46  ;;  %v2157_v46 = vld [vmem:[%s2684_s3 + $0x38] sm:$0xff] }
 0x1a7   : > { %1193 = vrot.lane.b32.xlu0 %v2531_v44, %s2230_s27  ;;  %1202 = vrot.lane.b32.xlu1 %v2531_v44, %s2231_s28 }
 0x1ab   : > { %1372 = vrot.lane.b32.xlu0 %v2531_v44, %s2232_s29  ;;  %1204 = vrot.lane.b32.xlu1 %v1192_v47, %s2231_s28  ;;  %s251_s28 = scalar_lea.vmem %s2687_s6, %s2167_s23 }
 0x1af   : > { %1464 = vrot.lane.b32.xlu0 %v2531_v44, %s2233_s30  ;;  %1195 = vrot.lane.b32.xlu1 %v1192_v47, %s2230_s27 }
 0x1b3   : > { %1640 = vrot.lane.b32.xlu0 %v2531_v44, %s2234_s7  ;;  %1374 = vrot.lane.b32.xlu1 %v1192_v47, %s2232_s29 }
 0x1b7   : > { %1732 = vrot.lane.b32.xlu0 %v2531_v44, %s2235_s8  ;;  %1466 = vrot.lane.b32.xlu1 %v1192_v47, %s2233_s30 }
 0x1bb   : > { %1824 = vrot.lane.b32.xlu0 %v2531_v44, %s2236_s9  ;;  %1642 = vrot.lane.b32.xlu1 %v1192_v47, %s2234_s7 }
 0x1bf   : > { %1916 = vrot.lane.b32.xlu0 %v2531_v44, %s2237_s10  ;;  %1734 = vrot.lane.b32.xlu1 %v1192_v47, %s2235_s8 }
 0x1c3   : > { %2011 = vperm.xlu0 %2219, %v2008_v48   ;;  %1826 = vrot.lane.b32.xlu1 %v1192_v47, %s2236_s9 }
 0x1c7   : > { %1918 = vrot.lane.b32.xlu1 %v1192_v47, %s2237_s10 }
 0x219   : > { %v1203_v49 = vpop.permute.xlu1 %1202  ;;  %v1194_v50 = vpop.permute.xlu0 %1193 }
 0x21d   : > { %v1205_v51 = vpop.permute.xlu1 %1204  ;;  %v1373_v63 = vpop.permute.xlu0 %1372 }
 0x21e   : > { %v1206_v53 = vsel %vm291_vm1, %v1203_v49, %v1205_v51  ;;  %v1207_v54 = vsel %vm291_vm1, %v1205_v51, %v1203_v49 }
 0x21f   : > { %v1208_v55 = vmul.f32 %v1207_v54, %v2351_v15  ;;  %v1209_v56 = vmul.f32 %v1206_v53, %v2354_v16 }
 0x221   : > { %2131 = vmatprep.subr.msk.mxu1 %vm313_vm2, %v1209_v56  ;;  %v1196_v58 = vpop.permute.xlu1 %1195 }
 0x222   : > { %v1197_v60 = vsel %vm270_vm0, %v1194_v50, %v1196_v58  ;;  %v1198_v62 = vsel %vm270_vm0, %v1196_v58, %v1194_v50  ;;  %2132 = vmatpush1.msk.msra.mxu1 %vm313_vm2, %v1208_v55 }
 0x223   : > { %v1199_v15 = vmul.f32 %v1198_v62, %v2357_v17  ;;  %v1200_v16 = vmul.f32 %v1197_v60, %v2347_v14  ;;  %2133 = vmatmul.mubr.msk.f32.vlgmr.msra.gmra.mrb[0].mxu1 %vm309_vm4, %v2130_v57  ;;  %v1201_v14 = vld [vmem:[%s2684_s3] sm:$0xff]  ;;  %v1465_v17 = vpop.permute.xlu0 %1464 }
 0x224   : > { %1365 = vmatprep.mubr.f32.mxu1 %v2229_v0 }
 0x225   : > { %2134 = vmatprep.subr.msk.mxu1 %vm313_vm2, %v1200_v16  ;;  %v1375_v3 = vpop.permute.xlu1 %1374 }
 0x226   : > { %v1376_v4 = vsel %vm475_vm3, %v1373_v63, %v1375_v3  ;;  %2135 = vmatpush1.msk.msra.mxu1 %vm313_vm2, %v1199_v15  ;;  %v1377_v5 = vsel %vm475_vm3, %v1375_v3, %v1373_v63 }
 0x227   : > { %v1379_v6 = vmul.f32 %v1376_v4, %v2375_v28  ;;  %v1378_v12 = vmul.f32 %v1377_v5, %v2394_v36  ;;  %v2137_v36 = vld [vmem:[%s2684_s3 + $0x10] sm:$0xff]  ;;  %v1641_v21 = vpop.permute.xlu0 %1640 }
 0x229   : > { %2138 = vmatprep.subr.msk.mxu1 %vm313_vm2, %v1379_v6  ;;  %v1467_v10 = vpop.permute.xlu1 %1466 }
 0x22a   : > { %v1468_v18 = vsel %vm579_vm5, %v1465_v17, %v1467_v10  ;;  %v1469_v28 = vsel %vm579_vm5, %v1467_v10, %v1465_v17 }
 0x22b   : > { %v1471_v19 = vmul.f32 %v1468_v18, %v2401_v39  ;;  %2136 = vmatmul.mubr.msk.f32.vlgmr.msra.gmra.mrb[0].mxu1 %vm309_vm4, %v1201_v14  ;;  %v1470_v20 = vmul.f32 %v1469_v28, %v2413_v45  ;;  %v1733_v26 = vpop.permute.xlu0 %1732 }
 0x22c   : > { %2139 = vmatpush1.msk.msra.mxu1 %vm313_vm2, %v1378_v12  ;;  %1455 = vmatprep.mubr.f32.mxu1 %v2229_v0 }
 0x22d   : > { %2142 = vmatprep.subr.msk.mxu1 %vm313_vm2, %v1471_v19  ;;  %v1643_v39 = vpop.permute.xlu1 %1642 }
 0x22e   : > { %v1645_v22 = vsel %vm765_vm6, %v1643_v39, %v1641_v21  ;;  %v1644_v29 = vsel %vm765_vm6, %v1641_v21, %v1643_v39 }
 0x22f   : > { %v1647_v24 = vmul.f32 %v1645_v22, %v2433_v52  ;;  %v2145_v52 = vld [vmem:[%s2684_s3 + $0x20] sm:$0xff]  ;;  %v1646_v31 = vmul.f32 %v1644_v29, %v2449_v59  ;;  %v1825_v34 = vpop.permute.xlu0 %1824  ;;  %v2149_v59 = vld [vmem:[%s2684_s3 + $0x28] sm:$0xff] }
 0x231   : > { %v1735_v45 = vpop.permute.xlu1 %1734 }
 0x232   : > { %v1737_v30 = vsel %vm869_vm7, %v1735_v45, %v1733_v26  ;;  %v1736_v35 = vsel %vm869_vm7, %v1733_v26, %v1735_v45 }
 0x233   : > { %2140 = vmatmul.mubr.msk.f32.vlgmr.msra.gmra.mrb[0].mxu1 %vm309_vm4, %v2137_v36  ;;  %v1739_v32 = vmul.f32 %v1737_v30, %v2456_v61  ;;  %v1738_v61 = vmul.f32 %v1736_v35, %v2472_v11  ;;  %v1917_v40 = vpop.permute.xlu0 %1916  ;;  %v2153_v11 = vld [vmem:[%s2684_s3 + $0x30] sm:$0xff] }
 0x234   : > { %2143 = vmatpush1.msk.msra.mxu1 %vm313_vm2, %v1470_v20  ;;  %1547 = vmatprep.mubr.f32.mxu1 %v2229_v0 }
 0x235   : > { %2146 = vmatprep.subr.msk.mxu1 %vm313_vm2, %v1192_v47  ;;  %v1827_v9 = vpop.permute.xlu1 %1826 }
 0x236   : > { %v1829_v8 = vsel %vm973_vm8, %v1827_v9, %v1825_v34  ;;  %v1828_v41 = vsel %vm973_vm8, %v1825_v34, %v1827_v9 }
 0x237   : > { %v1831_v37 = vmul.f32 %v1829_v8, %v2479_v13  ;;  %v1830_v13 = vmul.f32 %v1828_v41, %v2495_v25  ;;  %v2161_v25 = vld [vmem:[%s2684_s3 + $0x40] sm:$0xff] }
 0x239   : > { %v1919_v38 = vpop.permute.xlu1 %1918 }
 0x23a   : > { %v1921_v42 = vsel %vm1077_vm9, %v1919_v38, %v1917_v40 }
 0x23b   : > { %2144 = vmatmul.mubr.msk.f32.vlgmr.msra.gmra.mrb[0].mxu1 %vm309_vm4, %v2141_v23  ;;  %v1923_v43 = vmul.f32 %v1921_v42, %v2502_v27 }
 0x23c   : > { %2147 = vmatpush1.msk.msra.mxu1 %vm313_vm2, %v2531_v44  ;;  %1631 = vmatprep.mubr.f32.mxu1 %v2229_v0  ;;  %v1920_v44 = vsel %vm1077_vm9, %v1917_v40, %v1919_v38 }
 0x23d   : > { %2150 = vmatprep.subr.msk.mxu1 %vm313_vm2, %v1647_v24  ;;  %v1922_v47 = vmul.f32 %v1920_v44, %v2514_v33 }
 0x242   : > { %v2012_v7 = vpop.permute.xlu0 %2011 }
 0x243   : > { %2148 = vmatmul.mubr.msk.f32.vlgmr.msra.gmra.mrb[0].mxu1 %vm309_vm4, %v2145_v52 }
 0x244   : > { %2151 = vmatpush1.msk.msra.mxu1 %vm313_vm2, %v1646_v31  ;;  %1723 = vmatprep.mubr.f32.mxu1 %v2229_v0 }
 0x245   : > { %2154 = vmatprep.subr.msk.mxu1 %vm313_vm2, %v1739_v32 }
 0x24b   : > { %2152 = vmatmul.mubr.msk.f32.vlgmr.msra.gmra.mrb[0].mxu1 %vm309_vm4, %v2149_v59 }
 0x24c   : > { %2155 = vmatpush1.msk.msra.mxu1 %vm313_vm2, %v1738_v61  ;;  %1815 = vmatprep.mubr.f32.mxu1 %v2229_v0 }
 0x24d   : > { %2158 = vmatprep.subr.msk.mxu1 %vm313_vm2, %v1831_v37 }
 0x253   : > { %2156 = vmatmul.mubr.msk.f32.vlgmr.msra.gmra.mrb[0].mxu1 %vm309_vm4, %v2153_v11 }
 0x254   : > { %2159 = vmatpush1.msk.msra.mxu1 %vm313_vm2, %v1830_v13  ;;  %1907 = vmatprep.mubr.f32.mxu1 %v2229_v0 }
 0x255   : > { %2162 = vmatprep.subr.msk.mxu1 %vm313_vm2, %v1923_v43 }
 0x25b   : > { %2160 = vmatmul.mubr.msk.f32.vlgmr.msra.gmra.mrb[0].mxu1 %vm309_vm4, %v2157_v46 }
 0x25c   : > { %2163 = vmatpush1.msk.msra.mxu1 %vm313_vm2, %v1922_v47  ;;  %1999 = vmatprep.mubr.f32.mxu1 %v2229_v0 }
 0x263   : > { %2164 = vmatmul.mubr.msk.f32.vlgmr.msra.gmra.mrb[0].mxu1 %vm309_vm4, %v2161_v25 }
 0x336   : > { %v2001_v27 = vpop.f32.mrb[0].mxu1 }
 0x337   : > { %v2014_v48 = vadd.f32 %v2012_v7, %v2001_v27  ;;  %v2003_v49 = vpop.f32.mrb[1].mxu1 }
 0x338   : > { %v2015_v50 = vadd.f32 %v2012_v7, %v2003_v49 }
 0x339   : > { %v2018_v51 = vrot.slane %v2014_v48, 4 }
 0x33a   : > { %v2019_v33 = vrot.slane %v2015_v50, 4 }
 0x33b   : > { %v2022_v53 = vmax.f32 %v2014_v48, %v2018_v51 }
 0x33c   : > { %v2023_v54 = vmax.f32 %v2015_v50, %v2019_v33 }
 0x33d   : > { %v2024_v55 = vadd.f32 %v2022_v53, %v2292_v1 }
 0x33e   : > { %v2025_v56 = vadd.f32 %v2023_v54, %v2300_v2 }
 0x340   : > { %v2028_v0 = vcombine.low %v2024_v55, %v2025_v56 }
 0x342   : > { %2030 = vst [vmem:[%s251_s28] sm:$0xff] %v2028_v0 }
 0x343 PF: > { %s16_s21 = sadd.s32 1, %s2227_s21  }
 0x344   : > { %p13_p4 = scmp.ge.s32.totalorder %s16_s21, 4  }
 0x346   :  { %15 = sbr.rel (!%p13_p4) target bundleno = 1 (0x1), region = 90 }

</bundles_post_ra>
